<compile_context>
chip_gen: v7x
topology: tpu7x:2x2x1
jax: 0.10.0
libtpu: 0.0.40
codegen_flags: <defaults>
</compile_context>

<pallas_src>
import functools
import math

import numpy as np
import jax
import jax.numpy as jnp
from jax import lax
from jax.experimental import pallas as pl
from jax.experimental.pallas import tpu as pltpu


def _round_up(a, b):
    return -(-a // b) * b


# ----------------------------- Pallas kernel ------------------------------ #
def _conv_bn_relu_stage(a, w_ref, r_ref, scale_ref, shift_ref):
    """One ConvBasic stage on a single image.

    a         : (Hin_pad, Win*Cin)       bf16 activation (rows >= Hin unused)
    w_ref     : (3, Win*Cin, Wout*Cout)  bf16 kw/stride/W-pad-folded weight
    r_ref     : (3, Hout_pad, Hin_pad)   bf16 0/1 kh/stride/H-pad row selection
    scale_ref : (1, Wout*Cout) f32       eval-BN scale (applied on f32 acc)
    shift_ref : (1, Wout*Cout) f32       eval-BN shift
    returns   : (Hout_pad, Wout*Cout)    bf16
    """
    acc = None
    for kh in range(3):
        # Row selection / kh-shift: exact 0/1 copy, kept bf16 for the MXU.
        sel = jnp.dot(r_ref[kh], a, preferred_element_type=jnp.float32)
        sel = sel.astype(jnp.bfloat16)
        term = jnp.dot(sel, w_ref[kh], preferred_element_type=jnp.float32)
        acc = term if acc is None else acc + term
    y = jnp.maximum(acc * scale_ref[...] + shift_ref[...], 0.0)
    return y.astype(jnp.bfloat16)


def _make_fused_kernel(n_stages):
    def kernel(*refs):
        x_ref = refs[0]
        stage_refs = refs[1:1 + 4 * n_stages]
        out_refs = refs[1 + 4 * n_stages:]
        a = x_ref[...]                                  # (H_pad, W*C) bf16
        for i in range(n_stages):
            w_ref, r_ref, sc_ref, sh_ref = stage_refs[4 * i:4 * i + 4]
            a = _conv_bn_relu_stage(a, w_ref, r_ref, sc_ref, sh_ref)
            out_refs[i][...] = a                        # bf16 lane-dense store
    return kernel


# ------------------ parameter init (mirrors module __init__) --------------- #
def init_msdn_first_layer(key, nIn, nOut, grFactor, nScales):
    params, strides = [], []
    cin = nIn
    for i in range(nScales):
        cout = nOut * grFactor[i]
        key, kw_, kg, kb, km, kv = jax.random.split(key, 6)
        w = jax.random.normal(kw_, (3, 3, cin, cout), jnp.float32) * math.sqrt(
            2.0 / (9 * cin))
        gamma = 1.0 + 0.1 * jax.random.normal(kg, (cout,), jnp.float32)
        beta = 0.1 * jax.random.normal(kb, (cout,), jnp.float32)
        mean = 0.1 * jax.random.normal(km, (cout,), jnp.float32)
        var = jnp.abs(jax.random.normal(kv, (cout,), jnp.float32)) + 0.5
        params.append(dict(w=w, gamma=gamma, beta=beta, mean=mean, var=var))
        strides.append(1 if i == 0 else 2)   # cifar branch: stride 1, then 2
        cin = cout
    return params, tuple(strides)


# -------------------- one-time weight/operand preparation ------------------ #
def prepare_msdn_first_layer(params, strides, in_hw, eps=1e-5):
    """Fold conv weights + eval-BatchNorm into the 2-D GEMM operands used by
    the fused kernel. Run once (inference weight preprocessing)."""
    Hin, Win = in_hw
    Hin_pad = _round_up(Hin, 8)
    ops, meta = [], []
    for p, s in zip(params, strides):
        w = p["w"]                                    # (3, 3, Cin, Cout) HWIO
        Cin, Cout = int(w.shape[2]), int(w.shape[3])
        Hout = (Hin + 2 - 3) // s + 1
        Wout = (Win + 2 - 3) // s + 1
        Hout_pad = _round_up(Hout, 8)                 # bf16 sublane-friendly

        # kw-shift / stride / W-padding folded into a block-structured weight;
        # GEMM output width = Wout*Cout (128 lanes for this config).
        sel = np.zeros((3, Win, Wout), np.float32)
        for kw in range(3):
            for wo in range(Wout):
                wi = wo * s + kw - 1
                if 0 <= wi < Win:
                    sel[kw, wi, wo] = 1.0
        wmat = jnp.einsum("kxw,hkio->hxiwo", jnp.asarray(sel), w)
        wmat = wmat.reshape(3, Win * Cin, Wout * Cout).astype(jnp.bfloat16)

        # kh-shift / stride / H-padding as a constant 0/1 row selection
        # (padded output rows are all-zero; padded input rows never selected).
        rmat = np.zeros((3, Hout_pad, Hin_pad), np.float32)
        for kh in range(3):
            for ho in range(Hout):
                hi = ho * s + kh - 1
                if 0 <= hi < Hin:
                    rmat[kh, ho, hi] = 1.0
        rmat = jnp.asarray(rmat, dtype=jnp.bfloat16)

        # Eval-mode BatchNorm affine, applied in f32 on the accumulator.
        scale = p["gamma"] / jnp.sqrt(p["var"] + eps)
        shift = p["beta"] - p["mean"] * scale
        scale_row = jnp.tile(scale, (Wout,)).reshape(1, Wout * Cout).astype(jnp.float32)
        shift_row = jnp.tile(shift, (Wout,)).reshape(1, Wout * Cout).astype(jnp.float32)

        ops.append((wmat, rmat, scale_row, shift_row))
        meta.append((Hout, Wout, Cout, Hout_pad))
        Hin, Win, Hin_pad = Hout, Wout, Hout_pad
    return ops, tuple(meta)


# ------------------------------- forward ----------------------------------- #
@functools.partial(jax.jit, static_argnames=("meta",))
def msdn_first_layer_forward(x_nchw, ops, meta):
    """Returns a list of NCHW f32 feature maps, one per scale."""
    N, C, H, W = x_nchw.shape
    n_stages = len(meta)
    H_pad = _round_up(H, 8)

    # NCHW -> per-image 2-D (H, W*C) bf16 layout (cast once, before any fanout).
    x = jnp.transpose(x_nchw, (0, 2, 3, 1)).astype(jnp.bfloat16)
    x = x.reshape(N, H, W * C)
    if H_pad != H:
        x = jnp.pad(x, ((0, 0), (0, H_pad - H), (0, 0)))
    x2d = x.reshape(N * H_pad, W * C)

    kernel = _make_fused_kernel(n_stages)

    inputs = [x2d]
    in_specs = [pl.BlockSpec((H_pad, W * C), lambda n: (n, 0))]
    out_shapes, out_specs = [], []
    flops = 0
    bytes_acc = x2d.size * 2
    hin_pad, wcin = H_pad, W * C
    for (wmat, rmat, scale_row, shift_row), (Hout, Wout, Cout, Hout_pad) in zip(ops, meta):
        wc = Wout * Cout
        inputs += [wmat, rmat, scale_row, shift_row]
        in_specs += [
            pl.BlockSpec(wmat.shape, lambda n: (0, 0, 0)),   # weights (resident)
            pl.BlockSpec(rmat.shape, lambda n: (0, 0, 0)),   # row selection
            pl.BlockSpec((1, wc), lambda n: (0, 0)),         # BN scale
            pl.BlockSpec((1, wc), lambda n: (0, 0)),         # BN shift
        ]
        out_shapes.append(jax.ShapeDtypeStruct((N * Hout_pad, wc), jnp.bfloat16))
        out_specs.append(pl.BlockSpec((Hout_pad, wc), lambda n: (n, 0)))
        # Executed FLOPs (selection dot + weight dot, 3 kh terms, per image).
        flops += N * 3 * 2 * (Hout_pad * hin_pad * wcin + Hout_pad * wcin * wc)
        bytes_acc += (wmat.size + rmat.size) * 2 + (scale_row.size + shift_row.size) * 4
        bytes_acc += N * Hout_pad * wc * 2
        hin_pad, wcin = Hout_pad, wc

    outs2d = pl.pallas_call(
        kernel,
        out_shape=tuple(out_shapes),
        grid=(N,),                                   # one image per grid step
        in_specs=in_specs,
        out_specs=tuple(out_specs),
        compiler_params=pltpu.CompilerParams(
            dimension_semantics=("parallel",)),       # v7x: both TCs get work
        cost_estimate=pl.CostEstimate(
            flops=flops, transcendentals=0, bytes_accessed=bytes_acc),
    )(*inputs)

    # Unflatten to NCHW f32 (module semantics); strip sublane-padding rows.
    res = []
    for y, (Hout, Wout, Cout, Hout_pad) in zip(outs2d, meta):
        y = y.reshape(N, Hout_pad, Wout, Cout)[:, :Hout]
        res.append(jnp.transpose(y, (0, 3, 1, 2)).astype(jnp.float32))
    return res


# ------------------------- pure-JAX reference ------------------------------ #
def _ref_conv_bn_relu(x_nhwc, w, gamma, beta, mean, var, stride, eps=1e-5):
    y = lax.conv_general_dilated(
        x_nhwc, w, window_strides=(stride, stride), padding=((1, 1), (1, 1)),
        dimension_numbers=("NHWC", "HWIO", "NHWC"))
    scale = gamma / jnp.sqrt(var + eps)
    return jnp.maximum(y * scale + (beta - mean * scale), 0.0)


def _ref_forward(x_nchw, params, strides):
    x = jnp.transpose(x_nchw, (0, 2, 3, 1))
    res = []
    for p, s in zip(params, strides):
        x = _ref_conv_bn_relu(x, p["w"], p["gamma"], p["beta"], p["mean"],
                              p["var"], s)
        res.append(jnp.transpose(x, (0, 3, 1, 2)))
    return res


# --------------------------------- main ------------------------------------ #
if __name__ == "__main__":
    key = jax.random.PRNGKey(0)
    k_x, k_p = jax.random.split(key)

    # Small cifar-like config.
    nIn, nOut = 4, 8
    grFactor = [1, 2, 4]
    nScales = 3

    x = jax.random.normal(k_x, (2, nIn, 16, 16), jnp.float32)   # NCHW input
    params, strides = init_msdn_first_layer(k_p, nIn, nOut, grFactor, nScales)

    # One-time weight preprocessing (BN fold + conv-as-GEMM operand build).
    ops, meta = prepare_msdn_first_layer(params, strides, in_hw=(16, 16))

    outs = msdn_first_layer_forward(x, ops, meta=meta)
    outs = [jax.block_until_ready(o) for o in outs]

    expected = [(2, 8, 16, 16), (2, 16, 8, 8), (2, 32, 4, 4)]
    assert [tuple(o.shape) for o in outs] == expected, \
        f"unexpected shapes {[o.shape for o in outs]}"
    assert all(bool(jnp.all(o >= 0)) for o in outs)   # ReLU sanity

    # Numerical check vs f32 XLA reference (loose tolerance: bf16 activations).
    refs = _ref_forward(x, params, strides)
    for o, r in zip(outs, refs):
        assert bool(jnp.allclose(o, r, atol=1e-1, rtol=1e-1)), \
            f"max abs err {float(jnp.max(jnp.abs(o - r)))}"

    print("KERNEL_OK")
</pallas_src>

<mosaic_0001>
module attributes {stable_mosaic.version = 11 : i64} {
  func.func @kernel(%arg0: i32, %arg1: memref<16x64xbf16, #tpu.memory_space<vmem>>, %arg2: memref<3x64x128xbf16, #tpu.memory_space<vmem>>, %arg3: memref<3x16x16xbf16, #tpu.memory_space<vmem>>, %arg4: memref<1x128xf32, #tpu.memory_space<vmem>>, %arg5: memref<1x128xf32, #tpu.memory_space<vmem>>, %arg6: memref<3x128x128xbf16, #tpu.memory_space<vmem>>, %arg7: memref<3x8x16xbf16, #tpu.memory_space<vmem>>, %arg8: memref<1x128xf32, #tpu.memory_space<vmem>>, %arg9: memref<1x128xf32, #tpu.memory_space<vmem>>, %arg10: memref<3x128x128xbf16, #tpu.memory_space<vmem>>, %arg11: memref<3x8x8xbf16, #tpu.memory_space<vmem>>, %arg12: memref<1x128xf32, #tpu.memory_space<vmem>>, %arg13: memref<1x128xf32, #tpu.memory_space<vmem>>, %arg14: memref<16x128xbf16, #tpu.memory_space<vmem>>, %arg15: memref<8x128xbf16, #tpu.memory_space<vmem>>, %arg16: memref<8x128xbf16, #tpu.memory_space<vmem>>) attributes {dimension_semantics = [#tpu.dimension_semantics<parallel>], iteration_bounds = array<i64: 2>, scalar_prefetch = 0 : i64, scratch_operands = 0 : i64, tpu.core_type = #tpu.core_type<tc>, window_params = [{transform_indices = @transform_0, window_bounds = array<i64: 16, 64>}, {pipeline_mode = #tpu.pipeline_mode<synchronous>, transform_indices = @transform_1, window_bounds = array<i64: 3, 64, 128>}, {pipeline_mode = #tpu.pipeline_mode<synchronous>, transform_indices = @transform_2, window_bounds = array<i64: 3, 16, 16>}, {pipeline_mode = #tpu.pipeline_mode<synchronous>, transform_indices = @transform_3, window_bounds = array<i64: 1, 128>}, {pipeline_mode = #tpu.pipeline_mode<synchronous>, transform_indices = @transform_4, window_bounds = array<i64: 1, 128>}, {pipeline_mode = #tpu.pipeline_mode<synchronous>, transform_indices = @transform_5, window_bounds = array<i64: 3, 128, 128>}, {pipeline_mode = #tpu.pipeline_mode<synchronous>, transform_indices = @transform_6, window_bounds = array<i64: 3, 8, 16>}, {pipeline_mode = #tpu.pipeline_mode<synchronous>, transform_indices = @transform_7, window_bounds = array<i64: 1, 128>}, {pipeline_mode = #tpu.pipeline_mode<synchronous>, transform_indices = @transform_8, window_bounds = array<i64: 1, 128>}, {pipeline_mode = #tpu.pipeline_mode<synchronous>, transform_indices = @transform_9, window_bounds = array<i64: 3, 128, 128>}, {pipeline_mode = #tpu.pipeline_mode<synchronous>, transform_indices = @transform_10, window_bounds = array<i64: 3, 8, 8>}, {pipeline_mode = #tpu.pipeline_mode<synchronous>, transform_indices = @transform_11, window_bounds = array<i64: 1, 128>}, {pipeline_mode = #tpu.pipeline_mode<synchronous>, transform_indices = @transform_12, window_bounds = array<i64: 1, 128>}, {transform_indices = @transform_13, window_bounds = array<i64: 16, 128>}, {transform_indices = @transform_14, window_bounds = array<i64: 8, 128>}, {transform_indices = @transform_15, window_bounds = array<i64: 8, 128>}]} {
    %c0 = arith.constant 0 : index
    %c0_0 = arith.constant 0 : index
    %0 = vector.load %arg1[%c0, %c0_0] : memref<16x64xbf16, #tpu.memory_space<vmem>>, vector<16x64xbf16>
    %c0_1 = arith.constant 0 : index
    %c0_2 = arith.constant 0 : index
    %c0_3 = arith.constant 0 : index
    %1 = vector.load %arg3[%c0_1, %c0_2, %c0_3] : memref<3x16x16xbf16, #tpu.memory_space<vmem>>, vector<1x16x16xbf16>
    %2 = vector.shape_cast %1 : vector<1x16x16xbf16> to vector<16x16xbf16>
    %cst = arith.constant dense<0.000000e+00> : vector<16x64xf32>
    %3 = tpu.matmul %2, %0, %cst {dimension_numbers = #tpu.dot_dimension_numbers<[1], [0], [0], [1], [0, 0, 1, 1], [], []>} : vector<16x16xbf16>, vector<16x64xbf16>, vector<16x64xf32> -> vector<16x64xf32>
    %4 = arith.truncf %3 : vector<16x64xf32> to vector<16x64xbf16>
    %c0_4 = arith.constant 0 : index
    %c0_5 = arith.constant 0 : index
    %c0_6 = arith.constant 0 : index
    %5 = vector.load %arg2[%c0_4, %c0_5, %c0_6] : memref<3x64x128xbf16, #tpu.memory_space<vmem>>, vector<1x64x128xbf16>
    %6 = vector.shape_cast %5 : vector<1x64x128xbf16> to vector<64x128xbf16>
    %cst_7 = arith.constant dense<0.000000e+00> : vector<16x128xf32>
    %7 = tpu.matmul %4, %6, %cst_7 {dimension_numbers = #tpu.dot_dimension_numbers<[1], [0], [0], [1], [0, 0, 1, 1], [], []>} : vector<16x64xbf16>, vector<64x128xbf16>, vector<16x128xf32> -> vector<16x128xf32>
    %c1 = arith.constant 1 : index
    %c0_8 = arith.constant 0 : index
    %c0_9 = arith.constant 0 : index
    %8 = vector.load %arg3[%c1, %c0_8, %c0_9] : memref<3x16x16xbf16, #tpu.memory_space<vmem>>, vector<1x16x16xbf16>
    %9 = vector.shape_cast %8 : vector<1x16x16xbf16> to vector<16x16xbf16>
    %cst_10 = arith.constant dense<0.000000e+00> : vector<16x64xf32>
    %10 = tpu.matmul %9, %0, %cst_10 {dimension_numbers = #tpu.dot_dimension_numbers<[1], [0], [0], [1], [0, 0, 1, 1], [], []>} : vector<16x16xbf16>, vector<16x64xbf16>, vector<16x64xf32> -> vector<16x64xf32>
    %11 = arith.truncf %10 : vector<16x64xf32> to vector<16x64xbf16>
    %c1_11 = arith.constant 1 : index
    %c0_12 = arith.constant 0 : index
    %c0_13 = arith.constant 0 : index
    %12 = vector.load %arg2[%c1_11, %c0_12, %c0_13] : memref<3x64x128xbf16, #tpu.memory_space<vmem>>, vector<1x64x128xbf16>
    %13 = vector.shape_cast %12 : vector<1x64x128xbf16> to vector<64x128xbf16>
    %cst_14 = arith.constant dense<0.000000e+00> : vector<16x128xf32>
    %14 = tpu.matmul %11, %13, %cst_14 {dimension_numbers = #tpu.dot_dimension_numbers<[1], [0], [0], [1], [0, 0, 1, 1], [], []>} : vector<16x64xbf16>, vector<64x128xbf16>, vector<16x128xf32> -> vector<16x128xf32>
    %15 = arith.addf %7, %14 : vector<16x128xf32>
    %c2 = arith.constant 2 : index
    %c0_15 = arith.constant 0 : index
    %c0_16 = arith.constant 0 : index
    %16 = vector.load %arg3[%c2, %c0_15, %c0_16] : memref<3x16x16xbf16, #tpu.memory_space<vmem>>, vector<1x16x16xbf16>
    %17 = vector.shape_cast %16 : vector<1x16x16xbf16> to vector<16x16xbf16>
    %cst_17 = arith.constant dense<0.000000e+00> : vector<16x64xf32>
    %18 = tpu.matmul %17, %0, %cst_17 {dimension_numbers = #tpu.dot_dimension_numbers<[1], [0], [0], [1], [0, 0, 1, 1], [], []>} : vector<16x16xbf16>, vector<16x64xbf16>, vector<16x64xf32> -> vector<16x64xf32>
    %19 = arith.truncf %18 : vector<16x64xf32> to vector<16x64xbf16>
    %c2_18 = arith.constant 2 : index
    %c0_19 = arith.constant 0 : index
    %c0_20 = arith.constant 0 : index
    %20 = vector.load %arg2[%c2_18, %c0_19, %c0_20] : memref<3x64x128xbf16, #tpu.memory_space<vmem>>, vector<1x64x128xbf16>
    %21 = vector.shape_cast %20 : vector<1x64x128xbf16> to vector<64x128xbf16>
    %cst_21 = arith.constant dense<0.000000e+00> : vector<16x128xf32>
    %22 = tpu.matmul %19, %21, %cst_21 {dimension_numbers = #tpu.dot_dimension_numbers<[1], [0], [0], [1], [0, 0, 1, 1], [], []>} : vector<16x64xbf16>, vector<64x128xbf16>, vector<16x128xf32> -> vector<16x128xf32>
    %23 = arith.addf %15, %22 : vector<16x128xf32>
    %c0_22 = arith.constant 0 : index
    %c0_23 = arith.constant 0 : index
    %24 = vector.load %arg4[%c0_22, %c0_23] : memref<1x128xf32, #tpu.memory_space<vmem>>, vector<1x128xf32>
    %25 = vector.broadcast %24 : vector<1x128xf32> to vector<16x128xf32>
    %26 = arith.mulf %23, %25 : vector<16x128xf32>
    %c0_24 = arith.constant 0 : index
    %c0_25 = arith.constant 0 : index
    %27 = vector.load %arg5[%c0_24, %c0_25] : memref<1x128xf32, #tpu.memory_space<vmem>>, vector<1x128xf32>
    %28 = vector.broadcast %27 : vector<1x128xf32> to vector<16x128xf32>
    %29 = arith.addf %26, %28 : vector<16x128xf32>
    %cst_26 = arith.constant 0.000000e+00 : f32
    %30 = vector.broadcast %cst_26 : f32 to vector<16x128xf32>
    %31 = arith.maximumf %29, %30 : vector<16x128xf32>
    %32 = arith.truncf %31 : vector<16x128xf32> to vector<16x128xbf16>
    %c0_27 = arith.constant 0 : index
    %c0_28 = arith.constant 0 : index
    %33 = vector.load %arg14[%c0_27, %c0_28] : memref<16x128xbf16, #tpu.memory_space<vmem>>, vector<16x128xbf16>
    tpu.vector_store %arg14[%c0_27, %c0_28], %32 {strides = array<i32>} : memref<16x128xbf16, #tpu.memory_space<vmem>>, vector<16x128xbf16>,
    %c0_29 = arith.constant 0 : index
    %c0_30 = arith.constant 0 : index
    %c0_31 = arith.constant 0 : index
    %34 = vector.load %arg7[%c0_29, %c0_30, %c0_31] : memref<3x8x16xbf16, #tpu.memory_space<vmem>>, vector<1x8x16xbf16>
    %35 = vector.shape_cast %34 : vector<1x8x16xbf16> to vector<8x16xbf16>
    %cst_32 = arith.constant dense<0.000000e+00> : vector<8x128xf32>
    %36 = tpu.matmul %35, %32, %cst_32 {dimension_numbers = #tpu.dot_dimension_numbers<[1], [0], [0], [1], [0, 0, 1, 1], [], []>} : vector<8x16xbf16>, vector<16x128xbf16>, vector<8x128xf32> -> vector<8x128xf32>
    %37 = arith.truncf %36 : vector<8x128xf32> to vector<8x128xbf16>
    %c0_33 = arith.constant 0 : index
    %c0_34 = arith.constant 0 : index
    %c0_35 = arith.constant 0 : index
    %38 = vector.load %arg6[%c0_33, %c0_34, %c0_35] : memref<3x128x128xbf16, #tpu.memory_space<vmem>>, vector<1x128x128xbf16>
    %39 = vector.shape_cast %38 : vector<1x128x128xbf16> to vector<128x128xbf16>
    %cst_36 = arith.constant dense<0.000000e+00> : vector<8x128xf32>
    %40 = tpu.matmul %37, %39, %cst_36 {dimension_numbers = #tpu.dot_dimension_numbers<[1], [0], [0], [1], [0, 0, 1, 1], [], []>} : vector<8x128xbf16>, vector<128x128xbf16>, vector<8x128xf32> -> vector<8x128xf32>
    %c1_37 = arith.constant 1 : index
    %c0_38 = arith.constant 0 : index
    %c0_39 = arith.constant 0 : index
    %41 = vector.load %arg7[%c1_37, %c0_38, %c0_39] : memref<3x8x16xbf16, #tpu.memory_space<vmem>>, vector<1x8x16xbf16>
    %42 = vector.shape_cast %41 : vector<1x8x16xbf16> to vector<8x16xbf16>
    %cst_40 = arith.constant dense<0.000000e+00> : vector<8x128xf32>
    %43 = tpu.matmul %42, %32, %cst_40 {dimension_numbers = #tpu.dot_dimension_numbers<[1], [0], [0], [1], [0, 0, 1, 1], [], []>} : vector<8x16xbf16>, vector<16x128xbf16>, vector<8x128xf32> -> vector<8x128xf32>
    %44 = arith.truncf %43 : vector<8x128xf32> to vector<8x128xbf16>
    %c1_41 = arith.constant 1 : index
    %c0_42 = arith.constant 0 : index
    %c0_43 = arith.constant 0 : index
    %45 = vector.load %arg6[%c1_41, %c0_42, %c0_43] : memref<3x128x128xbf16, #tpu.memory_space<vmem>>, vector<1x128x128xbf16>
    %46 = vector.shape_cast %45 : vector<1x128x128xbf16> to vector<128x128xbf16>
    %cst_44 = arith.constant dense<0.000000e+00> : vector<8x128xf32>
    %47 = tpu.matmul %44, %46, %cst_44 {dimension_numbers = #tpu.dot_dimension_numbers<[1], [0], [0], [1], [0, 0, 1, 1], [], []>} : vector<8x128xbf16>, vector<128x128xbf16>, vector<8x128xf32> -> vector<8x128xf32>
    %48 = arith.addf %40, %47 : vector<8x128xf32>
    %c2_45 = arith.constant 2 : index
    %c0_46 = arith.constant 0 : index
    %c0_47 = arith.constant 0 : index
    %49 = vector.load %arg7[%c2_45, %c0_46, %c0_47] : memref<3x8x16xbf16, #tpu.memory_space<vmem>>, vector<1x8x16xbf16>
    %50 = vector.shape_cast %49 : vector<1x8x16xbf16> to vector<8x16xbf16>
    %cst_48 = arith.constant dense<0.000000e+00> : vector<8x128xf32>
    %51 = tpu.matmul %50, %32, %cst_48 {dimension_numbers = #tpu.dot_dimension_numbers<[1], [0], [0], [1], [0, 0, 1, 1], [], []>} : vector<8x16xbf16>, vector<16x128xbf16>, vector<8x128xf32> -> vector<8x128xf32>
    %52 = arith.truncf %51 : vector<8x128xf32> to vector<8x128xbf16>
    %c2_49 = arith.constant 2 : index
    %c0_50 = arith.constant 0 : index
    %c0_51 = arith.constant 0 : index
    %53 = vector.load %arg6[%c2_49, %c0_50, %c0_51] : memref<3x128x128xbf16, #tpu.memory_space<vmem>>, vector<1x128x128xbf16>
    %54 = vector.shape_cast %53 : vector<1x128x128xbf16> to vector<128x128xbf16>
    %cst_52 = arith.constant dense<0.000000e+00> : vector<8x128xf32>
    %55 = tpu.matmul %52, %54, %cst_52 {dimension_numbers = #tpu.dot_dimension_numbers<[1], [0], [0], [1], [0, 0, 1, 1], [], []>} : vector<8x128xbf16>, vector<128x128xbf16>, vector<8x128xf32> -> vector<8x128xf32>
    %56 = arith.addf %48, %55 : vector<8x128xf32>
    %c0_53 = arith.constant 0 : index
    %c0_54 = arith.constant 0 : index
    %57 = vector.load %arg8[%c0_53, %c0_54] : memref<1x128xf32, #tpu.memory_space<vmem>>, vector<1x128xf32>
    %58 = vector.broadcast %57 : vector<1x128xf32> to vector<8x128xf32>
    %59 = arith.mulf %56, %58 : vector<8x128xf32>
    %c0_55 = arith.constant 0 : index
    %c0_56 = arith.constant 0 : index
    %60 = vector.load %arg9[%c0_55, %c0_56] : memref<1x128xf32, #tpu.memory_space<vmem>>, vector<1x128xf32>
    %61 = vector.broadcast %60 : vector<1x128xf32> to vector<8x128xf32>
    %62 = arith.addf %59, %61 : vector<8x128xf32>
    %cst_57 = arith.constant 0.000000e+00 : f32
    %63 = vector.broadcast %cst_57 : f32 to vector<8x128xf32>
    %64 = arith.maximumf %62, %63 : vector<8x128xf32>
    %65 = arith.truncf %64 : vector<8x128xf32> to vector<8x128xbf16>
    %c0_58 = arith.constant 0 : index
    %c0_59 = arith.constant 0 : index
    %66 = vector.load %arg15[%c0_58, %c0_59] : memref<8x128xbf16, #tpu.memory_space<vmem>>, vector<8x128xbf16>
    tpu.vector_store %arg15[%c0_58, %c0_59], %65 {strides = array<i32>} : memref<8x128xbf16, #tpu.memory_space<vmem>>, vector<8x128xbf16>,
    %c0_60 = arith.constant 0 : index
    %c0_61 = arith.constant 0 : index
    %c0_62 = arith.constant 0 : index
    %67 = vector.load %arg11[%c0_60, %c0_61, %c0_62] : memref<3x8x8xbf16, #tpu.memory_space<vmem>>, vector<1x8x8xbf16>
    %68 = vector.shape_cast %67 : vector<1x8x8xbf16> to vector<8x8xbf16>
    %cst_63 = arith.constant dense<0.000000e+00> : vector<8x128xf32>
    %69 = tpu.matmul %68, %65, %cst_63 {dimension_numbers = #tpu.dot_dimension_numbers<[1], [0], [0], [1], [0, 0, 1, 1], [], []>} : vector<8x8xbf16>, vector<8x128xbf16>, vector<8x128xf32> -> vector<8x128xf32>
    %70 = arith.truncf %69 : vector<8x128xf32> to vector<8x128xbf16>
    %c0_64 = arith.constant 0 : index
    %c0_65 = arith.constant 0 : index
    %c0_66 = arith.constant 0 : index
    %71 = vector.load %arg10[%c0_64, %c0_65, %c0_66] : memref<3x128x128xbf16, #tpu.memory_space<vmem>>, vector<1x128x128xbf16>
    %72 = vector.shape_cast %71 : vector<1x128x128xbf16> to vector<128x128xbf16>
    %cst_67 = arith.constant dense<0.000000e+00> : vector<8x128xf32>
    %73 = tpu.matmul %70, %72, %cst_67 {dimension_numbers = #tpu.dot_dimension_numbers<[1], [0], [0], [1], [0, 0, 1, 1], [], []>} : vector<8x128xbf16>, vector<128x128xbf16>, vector<8x128xf32> -> vector<8x128xf32>
    %c1_68 = arith.constant 1 : index
    %c0_69 = arith.constant 0 : index
    %c0_70 = arith.constant 0 : index
    %74 = vector.load %arg11[%c1_68, %c0_69, %c0_70] : memref<3x8x8xbf16, #tpu.memory_space<vmem>>, vector<1x8x8xbf16>
    %75 = vector.shape_cast %74 : vector<1x8x8xbf16> to vector<8x8xbf16>
    %cst_71 = arith.constant dense<0.000000e+00> : vector<8x128xf32>
    %76 = tpu.matmul %75, %65, %cst_71 {dimension_numbers = #tpu.dot_dimension_numbers<[1], [0], [0], [1], [0, 0, 1, 1], [], []>} : vector<8x8xbf16>, vector<8x128xbf16>, vector<8x128xf32> -> vector<8x128xf32>
    %77 = arith.truncf %76 : vector<8x128xf32> to vector<8x128xbf16>
    %c1_72 = arith.constant 1 : index
    %c0_73 = arith.constant 0 : index
    %c0_74 = arith.constant 0 : index
    %78 = vector.load %arg10[%c1_72, %c0_73, %c0_74] : memref<3x128x128xbf16, #tpu.memory_space<vmem>>, vector<1x128x128xbf16>
    %79 = vector.shape_cast %78 : vector<1x128x128xbf16> to vector<128x128xbf16>
    %cst_75 = arith.constant dense<0.000000e+00> : vector<8x128xf32>
    %80 = tpu.matmul %77, %79, %cst_75 {dimension_numbers = #tpu.dot_dimension_numbers<[1], [0], [0], [1], [0, 0, 1, 1], [], []>} : vector<8x128xbf16>, vector<128x128xbf16>, vector<8x128xf32> -> vector<8x128xf32>
    %81 = arith.addf %73, %80 : vector<8x128xf32>
    %c2_76 = arith.constant 2 : index
    %c0_77 = arith.constant 0 : index
    %c0_78 = arith.constant 0 : index
    %82 = vector.load %arg11[%c2_76, %c0_77, %c0_78] : memref<3x8x8xbf16, #tpu.memory_space<vmem>>, vector<1x8x8xbf16>
    %83 = vector.shape_cast %82 : vector<1x8x8xbf16> to vector<8x8xbf16>
    %cst_79 = arith.constant dense<0.000000e+00> : vector<8x128xf32>
    %84 = tpu.matmul %83, %65, %cst_79 {dimension_numbers = #tpu.dot_dimension_numbers<[1], [0], [0], [1], [0, 0, 1, 1], [], []>} : vector<8x8xbf16>, vector<8x128xbf16>, vector<8x128xf32> -> vector<8x128xf32>
    %85 = arith.truncf %84 : vector<8x128xf32> to vector<8x128xbf16>
    %c2_80 = arith.constant 2 : index
    %c0_81 = arith.constant 0 : index
    %c0_82 = arith.constant 0 : index
    %86 = vector.load %arg10[%c2_80, %c0_81, %c0_82] : memref<3x128x128xbf16, #tpu.memory_space<vmem>>, vector<1x128x128xbf16>
    %87 = vector.shape_cast %86 : vector<1x128x128xbf16> to vector<128x128xbf16>
    %cst_83 = arith.constant dense<0.000000e+00> : vector<8x128xf32>
    %88 = tpu.matmul %85, %87, %cst_83 {dimension_numbers = #tpu.dot_dimension_numbers<[1], [0], [0], [1], [0, 0, 1, 1], [], []>} : vector<8x128xbf16>, vector<128x128xbf16>, vector<8x128xf32> -> vector<8x128xf32>
    %89 = arith.addf %81, %88 : vector<8x128xf32>
    %c0_84 = arith.constant 0 : index
    %c0_85 = arith.constant 0 : index
    %90 = vector.load %arg12[%c0_84, %c0_85] : memref<1x128xf32, #tpu.memory_space<vmem>>, vector<1x128xf32>
    %91 = vector.broadcast %90 : vector<1x128xf32> to vector<8x128xf32>
    %92 = arith.mulf %89, %91 : vector<8x128xf32>
    %c0_86 = arith.constant 0 : index
    %c0_87 = arith.constant 0 : index
    %93 = vector.load %arg13[%c0_86, %c0_87] : memref<1x128xf32, #tpu.memory_space<vmem>>, vector<1x128xf32>
    %94 = vector.broadcast %93 : vector<1x128xf32> to vector<8x128xf32>
    %95 = arith.addf %92, %94 : vector<8x128xf32>
    %cst_88 = arith.constant 0.000000e+00 : f32
    %96 = vector.broadcast %cst_88 : f32 to vector<8x128xf32>
    %97 = arith.maximumf %95, %96 : vector<8x128xf32>
    %98 = arith.truncf %97 : vector<8x128xf32> to vector<8x128xbf16>
    %c0_89 = arith.constant 0 : index
    %c0_90 = arith.constant 0 : index
    %99 = vector.load %arg16[%c0_89, %c0_90] : memref<8x128xbf16, #tpu.memory_space<vmem>>, vector<8x128xbf16>
    tpu.vector_store %arg16[%c0_89, %c0_90], %98 {strides = array<i32>} : memref<8x128xbf16, #tpu.memory_space<vmem>>, vector<8x128xbf16>,
    return
  }
  func.func @transform_0(%arg0: i32) -> (i32, i32) {
    %c0_i32 = arith.constant 0 : i32
    %c0_i32_0 = arith.constant 0 : i32
    return %arg0, %c0_i32 : i32, i32
  }
  func.func @transform_1(%arg0: i32) -> (i32, i32, i32) {
    %c0_i32 = arith.constant 0 : i32
    %c0_i32_0 = arith.constant 0 : i32
    %c0_i32_1 = arith.constant 0 : i32
    %c0_i32_2 = arith.constant 0 : i32
    return %c0_i32, %c0_i32_0, %c0_i32_1 : i32, i32, i32
  }
  func.func @transform_2(%arg0: i32) -> (i32, i32, i32) {
    %c0_i32 = arith.constant 0 : i32
    %c0_i32_0 = arith.constant 0 : i32
    %c0_i32_1 = arith.constant 0 : i32
    %c0_i32_2 = arith.constant 0 : i32
    return %c0_i32, %c0_i32_0, %c0_i32_1 : i32, i32, i32
  }
  func.func @transform_3(%arg0: i32) -> (i32, i32) {
    %c0_i32 = arith.constant 0 : i32
    %c0_i32_0 = arith.constant 0 : i32
    %c0_i32_1 = arith.constant 0 : i32
    return %c0_i32, %c0_i32_0 : i32, i32
  }
  func.func @transform_4(%arg0: i32) -> (i32, i32) {
    %c0_i32 = arith.constant 0 : i32
    %c0_i32_0 = arith.constant 0 : i32
    %c0_i32_1 = arith.constant 0 : i32
    return %c0_i32, %c0_i32_0 : i32, i32
  }
  func.func @transform_5(%arg0: i32) -> (i32, i32, i32) {
    %c0_i32 = arith.constant 0 : i32
    %c0_i32_0 = arith.constant 0 : i32
    %c0_i32_1 = arith.constant 0 : i32
    %c0_i32_2 = arith.constant 0 : i32
    return %c0_i32, %c0_i32_0, %c0_i32_1 : i32, i32, i32
  }
  func.func @transform_6(%arg0: i32) -> (i32, i32, i32) {
    %c0_i32 = arith.constant 0 : i32
    %c0_i32_0 = arith.constant 0 : i32
    %c0_i32_1 = arith.constant 0 : i32
    %c0_i32_2 = arith.constant 0 : i32
    return %c0_i32, %c0_i32_0, %c0_i32_1 : i32, i32, i32
  }
  func.func @transform_7(%arg0: i32) -> (i32, i32) {
    %c0_i32 = arith.constant 0 : i32
    %c0_i32_0 = arith.constant 0 : i32
    %c0_i32_1 = arith.constant 0 : i32
    return %c0_i32, %c0_i32_0 : i32, i32
  }
  func.func @transform_8(%arg0: i32) -> (i32, i32) {
    %c0_i32 = arith.constant 0 : i32
    %c0_i32_0 = arith.constant 0 : i32
    %c0_i32_1 = arith.constant 0 : i32
    return %c0_i32, %c0_i32_0 : i32, i32
  }
  func.func @transform_9(%arg0: i32) -> (i32, i32, i32) {
    %c0_i32 = arith.constant 0 : i32
    %c0_i32_0 = arith.constant 0 : i32
    %c0_i32_1 = arith.constant 0 : i32
    %c0_i32_2 = arith.constant 0 : i32
    return %c0_i32, %c0_i32_0, %c0_i32_1 : i32, i32, i32
  }
  func.func @transform_10(%arg0: i32) -> (i32, i32, i32) {
    %c0_i32 = arith.constant 0 : i32
    %c0_i32_0 = arith.constant 0 : i32
    %c0_i32_1 = arith.constant 0 : i32
    %c0_i32_2 = arith.constant 0 : i32
    return %c0_i32, %c0_i32_0, %c0_i32_1 : i32, i32, i32
  }
  func.func @transform_11(%arg0: i32) -> (i32, i32) {
    %c0_i32 = arith.constant 0 : i32
    %c0_i32_0 = arith.constant 0 : i32
    %c0_i32_1 = arith.constant 0 : i32
    return %c0_i32, %c0_i32_0 : i32, i32
  }
  func.func @transform_12(%arg0: i32) -> (i32, i32) {
    %c0_i32 = arith.constant 0 : i32
    %c0_i32_0 = arith.constant 0 : i32
    %c0_i32_1 = arith.constant 0 : i32
    return %c0_i32, %c0_i32_0 : i32, i32
  }
  func.func @transform_13(%arg0: i32) -> (i32, i32) {
    %c0_i32 = arith.constant 0 : i32
    %c0_i32_0 = arith.constant 0 : i32
    return %arg0, %c0_i32 : i32, i32
  }
  func.func @transform_14(%arg0: i32) -> (i32, i32) {
    %c0_i32 = arith.constant 0 : i32
    %c0_i32_0 = arith.constant 0 : i32
    return %arg0, %c0_i32 : i32, i32
  }
  func.func @transform_15(%arg0: i32) -> (i32, i32) {
    %c0_i32 = arith.constant 0 : i32
    %c0_i32_0 = arith.constant 0 : i32
    return %arg0, %c0_i32 : i32, i32
  }
}

</mosaic_0001>

<bundles_post_ra>
// kernel: msdn_first_layer_forward.1
= control target key start
LH: loop header
LB: loop body
LE: loop exit
PB: predicated region body
PF: predicated region fallthrough
CT: control target
= control target key end

     0   :  { %s3361_s0 = inlined_call_operand.vmem [shape: bf16[32,64], index: 0, kind: input, shape index: {}]   ;;  %s3362_s1 = inlined_call_operand.vmem [shape: bf16[3,64,128], index: 1, kind: input, shape index: {}]   ;;  %s3363_s2 = inlined_call_operand.hbm [shape: bf16[3,16,16], index: 2, kind: input, shape index: {}]   ;;  %s3364_s3 = inlined_call_operand.vmem [shape: f32[1,128], index: 3, kind: input, shape index: {}]   ;;  %s3365_s4 = inlined_call_operand.vmem [shape: f32[1,128], index: 4, kind: input, shape index: {}]   ;;  %s3366_s5 = inlined_call_operand.vmem [shape: bf16[3,128,128], index: 5, kind: input, shape index: {}]   ;;  %s3367_s6 = inlined_call_operand.hbm [shape: bf16[3,8,16], index: 6, kind: input, shape index: {}]   ;;  %s3368_s7 = inlined_call_operand.vmem [shape: f32[1,128], index: 7, kind: input, shape index: {}]   ;;  %s3369_s8 = inlined_call_operand.vmem [shape: f32[1,128], index: 8, kind: input, shape index: {}]   ;;  %s3370_s9 = inlined_call_operand.vmem [shape: bf16[3,128,128], index: 9, kind: input, shape index: {}]   ;;  %s3371_s10 = inlined_call_operand.hbm [shape: bf16[3,8,8], index: 10, kind: input, shape index: {}]   ;;  %s3372_s11 = inlined_call_operand.vmem [shape: f32[1,128], index: 11, kind: input, shape index: {}]   ;;  %s3373_s12 = inlined_call_operand.vmem [shape: f32[1,128], index: 12, kind: input, shape index: {}]   ;;  %s3374_s13 = inlined_call_operand.vmem [shape: bf16[32,128], index: 13, kind: output, shape index: {0}]   ;;  %s3375_s14 = inlined_call_operand.vmem [shape: bf16[16,128], index: 14, kind: output, shape index: {1}]   ;;  %s3376_s15 = inlined_call_operand.vmem [shape: bf16[16,128], index: 15, kind: output, shape index: {2}]  }
   0x1   :  { %3380 = sst [smem:[#allocation10_spill]] %s3372_s11 }
   0x2   :  { %3381 = sst [smem:[#allocation11_spill]] %s3373_s12 }
   0x3   :  { %3382 = sst [smem:[#allocation12_spill]] %s3376_s15 }
   0x4   :  { %21 = vsyncpa [#allocation3], 0 }
   0x5   :  { %22 = vsyncpa [#allocation5], 0  ;;  %s2893_s18 = smov 0  }
   0x6 LB: > { %3383 = sst [smem:[#allocation9_spill]] %s2804_s18  ;;  %s2899_s19 = sadd.s32 4294967295, %s2804_s18   ;;  %s2804_s18 = sphi %s2893_s18, %s28_s18  }
   0x7   : > { %p2092_p0 = scmp.ge.s32.totalorder %s2804_s18, 1  ;;  %p389_p1 = scmp.lt.s32.totalorder %s2804_s18, 3 }
   0x8   : > { %p3377_p2 = scmp.eq.s32.totalorder %s2899_s19, 0  ;;  %s2806_s21 = smov [#allocation4]  }
   0x9   : > { %p2904_p3 = pnand %p2092_p0, %p389_p1  ;;  %s426_s22 = sshll.u32 %s2806_s21, 4  ;;  %s427_s22 = int_to_ptr.vmem [resolvable:$true] %s426_s22 }
   0xa   : > { %s2807_s23 = smov [#allocation2]   ;;  %s2808_s26 = smov [#allocation6]  }
   0xb   : > { %s3384_s20 = scalar_select %p2904_p3, 1, 0 }
   0xc   : > { %p2611_p4 = pneg %p2904_p3  ;;  %s404_s24 = sshll.u32 %s2807_s23, 4  ;;  %s2916_s24 = int_to_ptr.vmem [resolvable:$true] %s404_s24 }
   0xd   : > { %s448_s27 = sshll.u32 %s2808_s26, 4  ;;  %s2706_s30 = scalar_lea.hbm %s3367_s6, 192  ;;  %s2918_s27 = int_to_ptr.vmem [resolvable:$true] %s448_s27 }
   0xe   : > { %p2912_p5 = pnand %p3377_p2, %p2611_p4  ;;  %p2707_p6 = scmp.ne.s32.totalorder %s3367_s6, %s2706_s30 }
   0xf   : > { %p2713_p10 = scmp.lt.u32.totalorder %s2706_s30, %s3367_s6 }
  0x10   : > { %p2928_p7 = pneg %p2912_p5 }
  0x12   : > { %p2709_p8 = pnand %p2928_p7, %p2707_p6 }
  0x14   : > { %p2710_p9 = pneg %p2709_p8 }
  0x16   : > { %p2715_p11 = pnand %p2713_p10, %p2710_p9 }
  0x18   : > { %2718 = shalt.err (!%p2715_p11)
}
  0x19   : > { %s2719_s28 = scalar_lea.vmem %s427_s22, 192  ;;  %p2727_p1 = scmp.lt.s32.totalorder %s427_s22, %s427_s22 }
  0x1a   : > { %p2720_p12 = scmp.ne.s32.totalorder %s427_s22, %s2719_s28  ;;  %p2728_p4 = scmp.lt.s32.totalorder %s2719_s28, %s2719_s28 }
  0x1c   : > { %p2722_p13 = pnand %p2720_p12, %p2928_p7  ;;  %p2729_p2 = por %p2728_p4, %p2727_p1 }
  0x1e   : > { %p2723_p0 = pneg %p2722_p13 }
  0x20   : > { %p2730_p3 = pnand %p2729_p2, %p2723_p0 }
  0x22   : > { %2733 = shalt.err (!%p2730_p3)
}
  0x23   : > { %s2809_s29 = smov 64   ;;  %s2810_s16 = smov 4  }
  0x24   : > { %2617 = dma.hbm_to_vmem [thread:$0]  (!%p2912_p5), %s3367_s6, 192, %s427_s22, [#allocation5], %s2809_s29, %s2809_s29, %s2810_s16  }
  0x25   : > { %s2734_s18 = scalar_lea.hbm %s3363_s2, 384 }
  0x26   : > { %p2735_p2 = scmp.ne.s32.totalorder %s3363_s2, %s2734_s18  ;;  %p2741_p8 = scmp.lt.u32.totalorder %s2734_s18, %s3363_s2 }
  0x28   : > { %p2737_p3 = pnand %p2735_p2, %p2928_p7 }
  0x2a   : > { %p2738_p6 = pneg %p2737_p3 }
  0x2c   : > { %p2743_p9 = pnand %p2741_p8, %p2738_p6 }
  0x2e   : > { %2746 = shalt.err (!%p2743_p9)
}
  0x2f   : > { %s2747_s22 = scalar_lea.vmem %s2916_s24, 384  ;;  %p2755_p13 = scmp.lt.s32.totalorder %s2916_s24, %s2916_s24 }
  0x30   : > { %p2748_p10 = scmp.ne.s32.totalorder %s2916_s24, %s2747_s22  ;;  %p2756_p0 = scmp.lt.s32.totalorder %s2747_s22, %s2747_s22 }
  0x32   : > { %p2750_p11 = pnand %p2748_p10, %p2928_p7  ;;  %p2757_p1 = por %p2756_p0, %p2755_p13 }
  0x34   : > { %p2751_p12 = pneg %p2750_p11 }
  0x36   : > { %p2758_p4 = pnand %p2757_p1, %p2751_p12 }
  0x38   : > { %2761 = shalt.err (!%p2758_p4)
}
  0x39   : > { %2614 = dma.hbm_to_vmem [thread:$0]  (!%p2912_p5), %s3363_s2, 384, %s2916_s24, [#allocation3], %s2809_s29, %s2809_s29, %s2810_s16  }
  0x3a   : > { %s2762_s30 = scalar_lea.hbm %s3371_s10, 192 }
  0x3b   : > { %p2763_p2 = scmp.ne.s32.totalorder %s3371_s10, %s2762_s30  ;;  %p2769_p8 = scmp.lt.u32.totalorder %s2762_s30, %s3371_s10 }
  0x3d   : > { %p2765_p3 = pnand %p2763_p2, %p2928_p7 }
  0x3f   : > { %p2766_p6 = pneg %p2765_p3 }
  0x41   : > { %p2771_p9 = pnand %p2769_p8, %p2766_p6 }
  0x43   : > { %2774 = shalt.err (!%p2771_p9)
}
  0x44   : > { %s2775_s24 = scalar_lea.vmem %s2918_s27, 192  ;;  %p2783_p13 = scmp.lt.s32.totalorder %s2918_s27, %s2918_s27 }
  0x45   : > { %p2776_p10 = scmp.ne.s32.totalorder %s2918_s27, %s2775_s24  ;;  %p2784_p0 = scmp.lt.s32.totalorder %s2775_s24, %s2775_s24 }
  0x47   : > { %p2778_p11 = pnand %p2776_p10, %p2928_p7  ;;  %p2785_p1 = por %p2784_p0, %p2783_p13 }
  0x49   : > { %p2779_p12 = pneg %p2778_p11 }
  0x4b   : > { %p2786_p4 = pnand %p2785_p1, %p2779_p12 }
  0x4d   : > { %2789 = shalt.err (!%p2786_p4)
}
  0x4e   : > { %2620 = dma.hbm_to_vmem [thread:$0]  (!%p2912_p5), %s3371_s10, 192, %s2918_s27, [#allocation5], %s2809_s29, %s2809_s29, %s2810_s16  }
  0x4f   : > { %p3387_p2 = scmp.ne.s32.totalorder %s3384_s20, 0 }
  0x50   : > { %p3388_p7 = scmp.eq.s32.totalorder (!%p3387_p2), %s2899_s19, 0 }
  0x51   : > { %479 = sbr.rel (%p3387_p2) target bundleno = 1787 (0x6fb), region = 72 }
  0x58   : > { %2795 = dma.done.wait (%p3388_p7), [#allocation3], 384   ;;  %p3389_p3 = pmov %p3388_p7 }
  0x5a   : > { %2797 = vsyncadd (%p3389_p3), [#allocation3], 4294966912  ;;  %p3390_p6 = pmov %p3389_p3 }
  0x5b   : > { %p3391_p8 = pmov %p3389_p3 }
  0x5c   : > { %2799 = dma.done.wait (%p3390_p6), [#allocation5], 384  }
  0x5d   : > { %2801 = vsyncadd (%p3391_p8), [#allocation5], 4294966912  ;;  %s2101_s25 = sshll.u32 %s2899_s19, 1  ;;  %v2811_v0 = vmov 0.0   ;;  %vm2812_vm0 = vmmov 0   ;;  %v2643_v2 = vld [vmem:[#allocation2 + $0x8] sm:$0xff]  }
  0x5e   : > { %2373 = vmatprep.subr.bf16.mxu1 %v2811_v0  ;;  %p544_p5 = scmp.lt.s32.totalorder %s2101_s25, 3  ;;  %2375 = vmatprep.mubr.msk.bf16.mxu1 %vm2812_vm0, %v2811_v0  ;;  %vm579_vm1 = vcmask 130048   ;;  %v2644_v3 = vld [vmem:[%s3362_s1 + $0x20] sm:$0xff]   ;;  %v2645_v5 = vld [vmem:[%s3362_s1 + $0x28] sm:$0xff]   ;;  %v2647_v6 = vld [vmem:[%s3362_s1 + $0x30] sm:$0xff]   ;;  %vm719_vm2 = vcmask 523264  }
  0x5f   : > { %2367 = vmatprep.subr.bf16.mxu0 %v2811_v0  ;;  %2369 = vmatprep.mubr.msk.bf16.mxu0 %vm2812_vm0, %v2811_v0  ;;  %v2646_v4 = vld [vmem:[#allocation2] sm:$0xff]   ;;  %v2648_v7 = vld [vmem:[%s3362_s1 + $0x38] sm:$0xff]   ;;  %v2651_v9 = vld [vmem:[%s3362_s1 + $0x8] sm:$0xff]   ;;  %p555_p9 = scmp.lt.s32.totalorder %s2899_s19, 1  ;;  %vm1470_vm3 = vcmask 1043456   ;;  %vm1466_vm4 = vcmask 64512  }
  0x60   : > { %s3397_s25 = smov (!%p544_p5, %s2101_s25), 3  ;;  %v2650_v8 = vld [vmem:[%s3362_s1] sm:$0xff]   ;;  %v2652_v10 = vld [vmem:[%s3362_s1 + $0x10] sm:$0xff]   ;;  %v2653_v11 = vld [vmem:[%s3362_s1 + $0x18] sm:$0xff]   ;;  %s3392_s23 = sld [smem:[#allocation10_spill]] }
  0x61   : > { %s2102_s20 = sshll.u32 %s3397_s25, 2  ;;  %v2654_v22 = vld [vmem:[%s3362_s1 + $0x40] sm:$0xff]   ;;  %v2649_v23 = vld [vmem:[#allocation2 + $0x10] sm:$0xff]   ;;  %v2655_v24 = vld [vmem:[%s3362_s1 + $0x48] sm:$0xff]   ;;  %s3399_s19 = smov (!%p555_p9, %s2899_s19), 1 }
  0x62   : > { %s547_s29 = scalar_lea.vmem %s3361_s0, %s2102_s20  ;;  %v2656_v25 = vld [vmem:[%s3362_s1 + $0x50] sm:$0xff]   ;;  %v2657_v26 = vld [vmem:[%s3362_s1 + $0x58] sm:$0xff]   ;;  %v2145_v37 = vld [vmem:[%s3364_s3] ss:$0 sm:$0xff]  ;;  %s553_s16 = scalar_lea.vmem %s3374_s13, %s2102_s20 }
  0x63   : > { %v2642_v1 = vld [vmem:[%s547_s29] sm:$0xff]   ;;  %v994_v51 = vld [vmem:[#allocation4] sm:$0xf]  ;;  %v1056_v53 = vld [vmem:[#allocation4 + $0x4] sm:$0xf]  ;;  %s2105_s20 = sshll.u32 %s3399_s19, 2 }
  0x64   : > { %2374 = vmatpush3.bf16.msra.mxu1 %v2642_v1  ;;  %2368 = vmatpush3.bf16.msra.mxu0 %v2642_v1  ;;  %v2146_v40 = vld [vmem:[%s3365_s4] ss:$0 sm:$0xff]  ;;  %v2659_v55 = vld [vmem:[%s3366_s5 + $0x48] sm:$0xff]   ;;  %v2660_v56 = vld [vmem:[%s3366_s5 + $0x50] sm:$0xff]   ;;  %s558_s18 = scalar_lea.vmem %s3375_s14, %s2105_s20  ;;  %s3393_s24 = sld [smem:[#allocation11_spill]] }
  0x65   : > { %2379 = vmatprep.subr.bf16.mxu1 %v2811_v0  ;;  %2391 = vmatprep.subr.bf16.mxu0 %v2811_v0  ;;  %v1295_v52 = vld [vmem:[#allocation4 + $0x8] sm:$0xf]  ;;  %v2661_v57 = vld [vmem:[%s3366_s5 + $0x58] sm:$0xff]   ;;  %v2663_v59 = vld [vmem:[%s3366_s5 + $0x68] sm:$0xff]   ;;  %s3394_s27 = sld [smem:[#allocation12_spill]] }
  0x66   : > { %v2658_v54 = vld [vmem:[%s3366_s5 + $0x40] sm:$0xff]   ;;  %v2664_v60 = vld [vmem:[%s3366_s5 + $0x70] sm:$0xff]   ;;  %v2665_v61 = vld [vmem:[%s3366_s5 + $0x78] sm:$0xff]  }
  0x67   : > { %2376 = vmatmul.mubr.msk.bf16.vlgmr.msra.gmra.mrb[0].mxu1 %vm579_vm1, %v2643_v2  ;;  %2370 = vmatmul.mubr.msk.bf16.vlgmr.msra.gmra.mrb[0].mxu0 %vm579_vm1, %v2646_v4  ;;  %v2662_v58 = vld [vmem:[%s3366_s5 + $0x60] sm:$0xff]  }
  0x68   : > { %2380 = vmatpush3.bf16.msra.mxu1 %v2644_v3  ;;  %2387 = vmatprep.mubr.msk.bf16.mxu1 %vm2812_vm0, %v2811_v0 }
  0x69   : > { %2381 = vmatprep.subr.bf16.mxu1 %v2811_v0  ;;  %2399 = vmatprep.mubr.msk.bf16.mxu0 %vm2812_vm0, %v2811_v0 }
  0x6a   : > { %2392 = vmatpush3.bf16.msra.mxu0 %v2650_v8  ;;  %v2666_v8 = vld [vmem:[%s3366_s5] sm:$0xff]  }
  0x6b   : > { %2393 = vmatprep.subr.bf16.mxu0 %v2811_v0  ;;  %s562_s21 = scalar_lea.vmem %s3394_s27, %s2105_s20 }
  0x6c   : > { %2382 = vmatpush3.bf16.msra.mxu1 %v2645_v5 }
  0x6d   : > { %2383 = vmatprep.subr.bf16.mxu1 %v2811_v0 }
  0x6e   : > { %2394 = vmatpush3.bf16.msra.mxu0 %v2651_v9 }
  0x6f   : > { %2395 = vmatprep.subr.bf16.mxu0 %v2811_v0 }
  0x70   : > { %2384 = vmatpush3.bf16.msra.mxu1 %v2647_v6 }
  0x71   : > { %2385 = vmatprep.subr.bf16.mxu1 %v2811_v0 }
  0x72   : > { %2396 = vmatpush3.bf16.msra.mxu0 %v2652_v10 }
  0x73   : > { %2397 = vmatprep.subr.bf16.mxu0 %v2811_v0 }
  0x74   : > { %2386 = vmatpush3.bf16.msra.mxu1 %v2648_v7 }
  0x75   : > { %2403 = vmatprep.subr.bf16.mxu1 %v2811_v0 }
  0x76   : > { %2398 = vmatpush3.bf16.msra.mxu0 %v2653_v11 }
  0x77   : > { %2409 = vmatprep.subr.bf16.mxu0 %v2811_v0 }
 0x13a   : > { %v678_v12 = vpop.f32.mrb[0].mxu1  ;;  %v617_v14 = vpop.f32.mrb[0].mxu0 }
 0x13b   : > { %v2377_v13 = vpop.f32.mrb[1].mxu1  ;;  %v2371_v16 = vpop.f32.mrb[1].mxu0 }
 0x13c   : > { %v681_v15 = vpop.f32.mrb[2].mxu1  ;;  %v620_v19 = vpop.f32.mrb[2].mxu0  ;;  %v2667_v13 = vld [vmem:[%s3366_s5 + $0x8] sm:$0xff]   ;;  %v2670_v16 = vld [vmem:[%s3366_s5 + $0x20] sm:$0xff]  }
 0x13d   : > { %v685_v17 = vpack.c.bf16 %v681_v15, %v678_v12  ;;  %v2378_v18 = vpop.f32.mrb[3].mxu1  ;;  %v624_v20 = vpack.c.bf16 %v620_v19, %v617_v14  ;;  %v2372_v21 = vpop.f32.mrb[3].mxu0  ;;  %v2668_v14 = vld [vmem:[%s3366_s5 + $0x10] sm:$0xff]   ;;  %v2669_v15 = vld [vmem:[%s3366_s5 + $0x18] sm:$0xff]  }
 0x13e   : > { %v2672_v18 = vld [vmem:[%s3366_s5 + $0x30] sm:$0xff]   ;;  %v2673_v19 = vld [vmem:[%s3366_s5 + $0x38] sm:$0xff]  }
 0x13f   : > { %2388 = vmatmul.mubr.msk.bf16.vlgmr.msra.gmra.mrb[4].mxu1 %vm719_vm2, %v685_v17  ;;  %2400 = vmatmul.mubr.msk.bf16.vlgmr.msra.gmra.mrb[4].mxu0 %vm719_vm2, %v624_v20  ;;  %v2671_v17 = vld [vmem:[%s3366_s5 + $0x28] sm:$0xff]   ;;  %v2674_v20 = vld [vmem:[%s3366_s5 + $0x80] sm:$0xff]  }
 0x140   : > { %2404 = vmatpush3.bf16.msra.mxu1 %v2642_v1  ;;  %2405 = vmatprep.mubr.msk.bf16.mxu1 %vm2812_vm0, %v2811_v0 }
 0x141   : > { %2421 = vmatprep.subr.bf16.mxu1 %v2811_v0  ;;  %2410 = vmatpush3.bf16.msra.mxu0 %v2654_v22  ;;  %v2675_v22 = vld [vmem:[%s3366_s5 + $0x88] sm:$0xff]  }
 0x142   : > { %2417 = vmatprep.mubr.msk.bf16.mxu0 %vm2812_vm0, %v2811_v0  ;;  %2411 = vmatprep.subr.bf16.mxu0 %v2811_v0 }
 0x145   : > { %2412 = vmatpush3.bf16.msra.mxu0 %v2655_v24  ;;  %v2677_v24 = vld [vmem:[%s3366_s5 + $0x98] sm:$0xff]  }
 0x146   : > { %2413 = vmatprep.subr.bf16.mxu0 %v2811_v0 }
 0x147   : > { %2406 = vmatmul.mubr.msk.bf16.vlgmr.msra.gmra.mrb[8].mxu1 %vm579_vm1, %v2649_v23  ;;  %v2676_v23 = vld [vmem:[%s3366_s5 + $0x90] sm:$0xff]  }
 0x148   : > { %2423 = vmatprep.mubr.msk.bf16.mxu1 %vm2812_vm0, %v2811_v0 }
 0x149   : > { %2414 = vmatpush3.bf16.msra.mxu0 %v2656_v25  ;;  %v2678_v25 = vld [vmem:[%s3366_s5 + $0xa0] sm:$0xff]  }
 0x14a   : > { %2415 = vmatprep.subr.bf16.mxu0 %v2811_v0 }
 0x14d   : > { %2416 = vmatpush3.bf16.msra.mxu0 %v2657_v26  ;;  %v2679_v26 = vld [vmem:[%s3366_s5 + $0xa8] sm:$0xff]  }
 0x14e   : > { %2473 = vmatprep.subr.bf16.mxu0 %v2811_v0 }
 0x212   : > { %v757_v27 = vpop.f32.mrb[4].mxu1 }
 0x213   : > { %v2389_v28 = vpop.f32.mrb[5].mxu1 }
 0x214   : > { %v760_v29 = vpop.f32.mrb[6].mxu1  ;;  %v2681_v28 = vld [vmem:[%s3366_s5 + $0xb8] sm:$0xff]  }
 0x215   : > { %v2390_v30 = vpop.f32.mrb[7].mxu1 }
 0x216   : > { %v2208_v30 = vld [vmem:[%s3368_s7] ss:$0 sm:$0xff] }
 0x21a   : > { %v877_v31 = vpop.f32.mrb[8].mxu1 }
 0x21b   : > { %v2407_v32 = vpop.f32.mrb[9].mxu1 }
 0x21c   : > { %v880_v33 = vpop.f32.mrb[10].mxu1  ;;  %v2209_v32 = vld [vmem:[%s3369_s8] ss:$0 sm:$0xff] }
 0x21d   : > { %v884_v34 = vpack.c.bf16 %v880_v33, %v877_v31  ;;  %v2408_v35 = vpop.f32.mrb[11].mxu1 }
 0x21f   : > { %2418 = vmatmul.mubr.msk.bf16.vlgmr.msra.gmra.mrb[4].mxu0 %vm719_vm2, %v884_v34 }
 0x220   : > { %2475 = vmatprep.mubr.msk.bf16.mxu0 %vm2812_vm0, %v2811_v0 }
 0x2f2   : > { %v955_v36 = vpop.f32.mrb[4].mxu0 }
 0x2f3   : > { %v2577_v38 = vadd.f32 %v955_v36, %v757_v27  ;;  %v2419_v39 = vpop.f32.mrb[5].mxu0  ;;  %v2680_v27 = vld [vmem:[%s3366_s5 + $0xb0] sm:$0xff]  }
 0x2f4   : > { %v958_v41 = vpop.f32.mrb[6].mxu0 }
 0x2f5   : > { %v971_v42 = vmul.f32 %v2577_v38, %v2145_v37  ;;  %v2578_v43 = vadd.f32 %v958_v41, %v760_v29  ;;  %v2420_v44 = vpop.f32.mrb[7].mxu0  ;;  %v1465_v41 = vld [vmem:[#allocation6] sm:$0xf] }
 0x2f6   : > { %v2682_v44 = vld [vmem:[%s3370_s9 + $0x40] sm:$0xff]  }
 0x2f7   : > { %v980_v45 = vadd.f32 %v2146_v40, %v971_v42  ;;  %v972_v46 = vmul.f32 %v2578_v43, %v2145_v37  ;;  %v1771_v42 = vld [vmem:[#allocation6 + $0x8] sm:$0xf]  ;;  %v1532_v43 = vld [vmem:[#allocation6 + $0x4] sm:$0xf] }
 0x2f9   : > { %v981_v47 = vadd.f32 %v2146_v40, %v972_v46  ;;  %v982_v48 = vmax.f32 %v980_v45, 0.0  ;;  %v2683_v45 = vld [vmem:[%s3370_s9 + $0x48] sm:$0xff]   ;;  %v2684_v46 = vld [vmem:[%s3370_s9 + $0x50] sm:$0xff]  }
 0x2fb   : > { %v983_v49 = vmax.f32 %v981_v47, 0.0  ;;  %v2685_v47 = vld [vmem:[%s3370_s9 + $0x58] sm:$0xff]  }
 0x2fd   : > { %v984_v50 = vpack.c.bf16 %v983_v49, %v982_v48  ;;  %v2686_v48 = vld [vmem:[%s3370_s9 + $0x60] sm:$0xff]   ;;  %v2687_v49 = vld [vmem:[%s3370_s9 + $0x68] sm:$0xff]  }
 0x2ff   : > { %2279 = vst [vmem:[%s553_s16] sm:$0xff] %v984_v50   ;;  %2422 = vmatpush3.bf16.msra.mxu1 %v984_v50  ;;  %2474 = vmatpush3.bf16.msra.mxu0 %v984_v50 }
 0x300   : > { %2427 = vmatprep.subr.bf16.mxu1 %v2811_v0  ;;  %2499 = vmatprep.subr.bf16.mxu0 %v2811_v0 }
 0x302   : > { %2424 = vmatmul.mubr.msk.bf16.vlgmr.msra.gmra.mrb[12].mxu1 %vm579_vm1, %v994_v51  ;;  %2476 = vmatmul.mubr.msk.bf16.vlgmr.msra.gmra.mrb[8].mxu0 %vm579_vm1, %v1295_v52  ;;  %v2689_v51 = vld [vmem:[%s3370_s9 + $0x78] sm:$0xff]  }
 0x303   : > { %2428 = vmatpush3.bf16.msra.mxu1 %v984_v50  ;;  %2429 = vmatprep.mubr.msk.bf16.mxu1 %vm2812_vm0, %v2811_v0  ;;  %v2688_v50 = vld [vmem:[%s3370_s9 + $0x70] sm:$0xff]  }
 0x304   : > { %2433 = vmatprep.subr.bf16.mxu1 %v2811_v0  ;;  %2501 = vmatprep.mubr.msk.bf16.mxu0 %vm2812_vm0, %v2811_v0 }
 0x30a   : > { %2430 = vmatmul.mubr.msk.bf16.vlgmr.msra.gmra.mrb[16].mxu1 %vm579_vm1, %v1056_v53 }
 0x30b   : > { %2434 = vmatpush3.bf16.msra.mxu1 %v2658_v54  ;;  %2449 = vmatprep.mubr.msk.bf16.mxu1 %vm2812_vm0, %v2811_v0 }
 0x30c   : > { %2435 = vmatprep.subr.bf16.mxu1 %v2811_v0 }
 0x30f   : > { %2436 = vmatpush3.bf16.msra.mxu1 %v2659_v55 }
 0x310   : > { %2437 = vmatprep.subr.bf16.mxu1 %v2811_v0 }
 0x313   : > { %2438 = vmatpush3.bf16.msra.mxu1 %v2660_v56 }
 0x314   : > { %2439 = vmatprep.subr.bf16.mxu1 %v2811_v0 }
 0x317   : > { %2440 = vmatpush3.bf16.msra.mxu1 %v2661_v57 }
 0x318   : > { %2441 = vmatprep.subr.bf16.mxu1 %v2811_v0 }
 0x31b   : > { %2442 = vmatpush3.bf16.msra.mxu1 %v2662_v58 }
 0x31c   : > { %2443 = vmatprep.subr.bf16.mxu1 %v2811_v0 }
 0x31f   : > { %2444 = vmatpush3.bf16.msra.mxu1 %v2663_v59 }
 0x320   : > { %2445 = vmatprep.subr.bf16.mxu1 %v2811_v0 }
 0x323   : > { %2446 = vmatpush3.bf16.msra.mxu1 %v2664_v60 }
 0x324   : > { %2447 = vmatprep.subr.bf16.mxu1 %v2811_v0 }
 0x327   : > { %2448 = vmatpush3.bf16.msra.mxu1 %v2665_v61  ;;  %v2690_v61 = vld [vmem:[%s3370_s9] sm:$0xff]  }
 0x328   : > { %2453 = vmatprep.subr.bf16.mxu1 %v2811_v0 }
 0x3d5   : > { %v1032_v62 = vpop.f32.mrb[12].mxu1  ;;  %v3148_v63 = vpop.f32.mrb[8].mxu0 }
 0x3d6   : > { %v2425_v1 = vpop.f32.mrb[13].mxu1  ;;  %v2477_v2 = vpop.f32.mrb[9].mxu0  ;;  %v1038_v21 = vpack.c.bf16 %v1032_v62, %v1032_v62  ;;  %v1339_v29 = vpack.c.bf16 %v3148_v63, %v3148_v63 }
 0x3d7   : > { %v1035_v3 = vpop.f32.mrb[14].mxu1  ;;  %v1336_v4 = vpop.f32.mrb[10].mxu0 }
 0x3d8   : > { %v2426_v5 = vpop.f32.mrb[15].mxu1  ;;  %v2478_v6 = vpop.f32.mrb[11].mxu0  ;;  %v2691_v3 = vld [vmem:[%s3370_s9 + $0x8] sm:$0xff]   ;;  %v2692_v4 = vld [vmem:[%s3370_s9 + $0x10] sm:$0xff]  }
 0x3d9   : > { %v2693_v5 = vld [vmem:[%s3370_s9 + $0x18] sm:$0xff]   ;;  %v2694_v6 = vld [vmem:[%s3370_s9 + $0x20] sm:$0xff]  }
 0x3dd   : > { %v1094_v7 = vpop.f32.mrb[16].mxu1 }
 0x3de   : > { %v1100_v9 = vpack.c.bf16 %v1094_v7, %v1094_v7  ;;  %v2431_v10 = vpop.f32.mrb[17].mxu1  ;;  %v2695_v7 = vld [vmem:[%s3370_s9 + $0x28] sm:$0xff]  }
 0x3df   : > { %v1097_v11 = vpop.f32.mrb[18].mxu1  ;;  %v2698_v10 = vld [vmem:[%s3370_s9 + $0x80] sm:$0xff]  }
 0x3e0   : > { %v2432_v12 = vpop.f32.mrb[19].mxu1  ;;  %2450 = vmatmul.mubr.bf16.vlgmr.msra.gmra.mrb[20].mxu1 %v1100_v9  ;;  %v2697_v9 = vld [vmem:[%s3370_s9 + $0x38] sm:$0xff]  }
 0x3e1   : > { %2454 = vmatpush3.bf16.msra.mxu1 %v2666_v8  ;;  %2469 = vmatprep.mubr.msk.bf16.mxu1 %vm2812_vm0, %v2811_v0  ;;  %v2696_v8 = vld [vmem:[%s3370_s9 + $0x30] sm:$0xff]   ;;  %v2699_v12 = vld [vmem:[%s3370_s9 + $0x88] sm:$0xff]  }
 0x3e2   : > { %2455 = vmatprep.subr.bf16.mxu1 %v2811_v0 }
 0x3e5   : > { %2456 = vmatpush3.bf16.msra.mxu1 %v2667_v13  ;;  %v2700_v13 = vld [vmem:[%s3370_s9 + $0x90] sm:$0xff]  }
 0x3e6   : > { %2457 = vmatprep.subr.bf16.mxu1 %v2811_v0 }
 0x3e9   : > { %2458 = vmatpush3.bf16.msra.mxu1 %v2668_v14  ;;  %v2701_v14 = vld [vmem:[%s3370_s9 + $0x98] sm:$0xff]  }
 0x3ea   : > { %2459 = vmatprep.subr.bf16.mxu1 %v2811_v0 }
 0x3ed   : > { %2460 = vmatpush3.bf16.msra.mxu1 %v2669_v15  ;;  %v2702_v15 = vld [vmem:[%s3370_s9 + $0xa0] sm:$0xff]  }
 0x3ee   : > { %2461 = vmatprep.subr.bf16.mxu1 %v2811_v0 }
 0x3f1   : > { %2462 = vmatpush3.bf16.msra.mxu1 %v2670_v16  ;;  %v2703_v16 = vld [vmem:[%s3370_s9 + $0xa8] sm:$0xff]  }
 0x3f2   : > { %2463 = vmatprep.subr.bf16.mxu1 %v2811_v0 }
 0x3f5   : > { %2464 = vmatpush3.bf16.msra.mxu1 %v2671_v17  ;;  %v2704_v17 = vld [vmem:[%s3370_s9 + $0xb0] sm:$0xff]  }
 0x3f6   : > { %2465 = vmatprep.subr.bf16.mxu1 %v2811_v0 }
 0x3f9   : > { %2466 = vmatpush3.bf16.msra.mxu1 %v2672_v18  ;;  %v2705_v18 = vld [vmem:[%s3370_s9 + $0xb8] sm:$0xff]  }
 0x3fa   : > { %2467 = vmatprep.subr.bf16.mxu1 %v2811_v0 }
 0x3fd   : > { %2468 = vmatpush3.bf16.msra.mxu1 %v2673_v19 }
 0x3fe   : > { %2479 = vmatprep.subr.bf16.mxu1 %v2811_v0 }
 0x400   : > { %2470 = vmatmul.mubr.bf16.vlgmr.msra.gmra.mrb[20].mxu1 %v1038_v21 }
 0x401   : > { %2480 = vmatpush3.bf16.msra.mxu1 %v2674_v20  ;;  %2495 = vmatprep.mubr.msk.bf16.mxu1 %vm2812_vm0, %v2811_v0  ;;  %v2269_v20 = vld [vmem:[%s3392_s23] ss:$0 sm:$0xff] }
 0x402   : > { %2481 = vmatprep.subr.bf16.mxu1 %v2811_v0 }
 0x405   : > { %2482 = vmatpush3.bf16.msra.mxu1 %v2675_v22  ;;  %v2270_v22 = vld [vmem:[%s3393_s24] ss:$0 sm:$0xff] }
 0x406   : > { %2483 = vmatprep.subr.bf16.mxu1 %v2811_v0 }
 0x409   : > { %2484 = vmatpush3.bf16.msra.mxu1 %v2676_v23 }
 0x40a   : > { %2485 = vmatprep.subr.bf16.mxu1 %v2811_v0 }
 0x40d   : > { %2486 = vmatpush3.bf16.msra.mxu1 %v2677_v24 }
 0x40e   : > { %2487 = vmatprep.subr.bf16.mxu1 %v2811_v0 }
 0x411   : > { %2488 = vmatpush3.bf16.msra.mxu1 %v2678_v25 }
 0x412   : > { %2489 = vmatprep.subr.bf16.mxu1 %v2811_v0 }
 0x415   : > { %2490 = vmatpush3.bf16.msra.mxu1 %v2679_v26 }
 0x416   : > { %2491 = vmatprep.subr.bf16.mxu1 %v2811_v0 }
 0x419   : > { %2492 = vmatpush3.bf16.msra.mxu1 %v2680_v27 }
 0x41a   : > { %2493 = vmatprep.subr.bf16.mxu1 %v2811_v0 }
 0x41d   : > { %2494 = vmatpush3.bf16.msra.mxu1 %v2681_v28 }
 0x41e   : > { %2551 = vmatprep.subr.bf16.mxu1 %v2811_v0 }
 0x420   : > { %2496 = vmatmul.mubr.bf16.vlgmr.msra.gmra.mrb[20].mxu1 %v1339_v29 }
 0x421   : > { %2553 = vmatprep.mubr.msk.bf16.mxu1 %vm2812_vm0, %v2811_v0 }
 0x4f3   : > { %v1439_v31 = vpop.f32.mrb[20].mxu1 }
 0x4f4   : > { %v1453_v33 = vmul.f32 %v2208_v30, %v1439_v31  ;;  %v2497_v34 = vpop.f32.mrb[21].mxu1 }
 0x4f5   : > { %v1442_v35 = vpop.f32.mrb[22].mxu1 }
 0x4f6   : > { %v1461_v36 = vadd.f32 %v2209_v32, %v1453_v33  ;;  %v2498_v37 = vpop.f32.mrb[23].mxu1 }
 0x4f8   : > { %v1462_v38 = vmax.f32 %v1461_v36, 0.0 }
 0x4fa   : > { %v1463_v39 = vpack.c.bf16 %v1462_v38, %v1462_v38 }
 0x4fc   : > { %1464 = vst [vmem:[%s558_s18] sm:$0xf] %v1463_v39  ;;  %v1472_v40 = vsel %vm1470_vm3, %v1463_v39, 0 }
 0x4fd   : > { %2500 = vmatpush3.bf16.msra.mxu0 %v1472_v40  ;;  %2552 = vmatpush3.bf16.msra.mxu1 %v1472_v40 }
 0x4fe   : > { %2505 = vmatprep.subr.bf16.mxu0 %v2811_v0 }
 0x500   : > { %2502 = vmatmul.mubr.msk.bf16.vlgmr.msra.gmra.mrb[12].mxu0 %vm1466_vm4, %v1465_v41  ;;  %2554 = vmatmul.mubr.msk.bf16.vlgmr.msra.gmra.mrb[24].mxu1 %vm1466_vm4, %v1771_v42 }
 0x501   : > { %2506 = vmatpush3.bf16.msra.mxu0 %v1472_v40  ;;  %2507 = vmatprep.mubr.msk.bf16.mxu0 %vm2812_vm0, %v2811_v0 }
 0x502   : > { %2511 = vmatprep.subr.bf16.mxu0 %v2811_v0 }
 0x508   : > { %2508 = vmatmul.mubr.msk.bf16.vlgmr.msra.gmra.mrb[16].mxu0 %vm1466_vm4, %v1532_v43 }
 0x509   : > { %2512 = vmatpush3.bf16.msra.mxu0 %v2682_v44  ;;  %2527 = vmatprep.mubr.msk.bf16.mxu0 %vm2812_vm0, %v2811_v0 }
 0x50a   : > { %2513 = vmatprep.subr.bf16.mxu0 %v2811_v0 }
 0x50d   : > { %2514 = vmatpush3.bf16.msra.mxu0 %v2683_v45 }
 0x50e   : > { %2515 = vmatprep.subr.bf16.mxu0 %v2811_v0 }
 0x511   : > { %2516 = vmatpush3.bf16.msra.mxu0 %v2684_v46 }
 0x512   : > { %2517 = vmatprep.subr.bf16.mxu0 %v2811_v0 }
 0x515   : > { %2518 = vmatpush3.bf16.msra.mxu0 %v2685_v47 }
 0x516   : > { %2519 = vmatprep.subr.bf16.mxu0 %v2811_v0 }
 0x519   : > { %2520 = vmatpush3.bf16.msra.mxu0 %v2686_v48 }
 0x51a   : > { %2521 = vmatprep.subr.bf16.mxu0 %v2811_v0 }
 0x51d   : > { %2522 = vmatpush3.bf16.msra.mxu0 %v2687_v49 }
 0x51e   : > { %2523 = vmatprep.subr.bf16.mxu0 %v2811_v0 }
 0x521   : > { %2524 = vmatpush3.bf16.msra.mxu0 %v2688_v50 }
 0x522   : > { %2525 = vmatprep.subr.bf16.mxu0 %v2811_v0 }
 0x525   : > { %2526 = vmatpush3.bf16.msra.mxu0 %v2689_v51 }
 0x526   : > { %2531 = vmatprep.subr.bf16.mxu0 %v2811_v0 }
 0x5d3   : > { %v1508_v52 = vpop.f32.mrb[12].mxu0  ;;  %v3276_v53 = vpop.f32.mrb[24].mxu1 }
 0x5d4   : > { %v2503_v54 = vpop.f32.mrb[13].mxu0  ;;  %v2555_v55 = vpop.f32.mrb[25].mxu1  ;;  %v1514_v11 = vpack.c.bf16 %v1508_v52, %v1508_v52  ;;  %v1815_v19 = vpack.c.bf16 %v3276_v53, %v3276_v53 }
 0x5d5   : > { %v1511_v56 = vpop.f32.mrb[14].mxu0  ;;  %v1812_v57 = vpop.f32.mrb[26].mxu1 }
 0x5d6   : > { %v2504_v58 = vpop.f32.mrb[15].mxu0  ;;  %v2556_v59 = vpop.f32.mrb[27].mxu1 }
 0x5db   : > { %v1570_v60 = vpop.f32.mrb[16].mxu0 }
 0x5dc   : > { %v1576_v62 = vpack.c.bf16 %v1570_v60, %v1570_v60  ;;  %v2509_v63 = vpop.f32.mrb[17].mxu0 }
 0x5dd   : > { %v1573_v1 = vpop.f32.mrb[18].mxu0 }
 0x5de   : > { %2528 = vmatmul.mubr.bf16.vlgmr.msra.gmra.mrb[20].mxu0 %v1576_v62  ;;  %v2510_v2 = vpop.f32.mrb[19].mxu0 }
 0x5df   : > { %2532 = vmatpush3.bf16.msra.mxu0 %v2690_v61  ;;  %2547 = vmatprep.mubr.msk.bf16.mxu0 %vm2812_vm0, %v2811_v0 }
 0x5e0   : > { %2533 = vmatprep.subr.bf16.mxu0 %v2811_v0 }
 0x5e3   : > { %2534 = vmatpush3.bf16.msra.mxu0 %v2691_v3 }
 0x5e4   : > { %2535 = vmatprep.subr.bf16.mxu0 %v2811_v0 }
 0x5e7   : > { %2536 = vmatpush3.bf16.msra.mxu0 %v2692_v4 }
 0x5e8   : > { %2537 = vmatprep.subr.bf16.mxu0 %v2811_v0 }
 0x5eb   : > { %2538 = vmatpush3.bf16.msra.mxu0 %v2693_v5 }
 0x5ec   : > { %2539 = vmatprep.subr.bf16.mxu0 %v2811_v0 }
 0x5ef   : > { %2540 = vmatpush3.bf16.msra.mxu0 %v2694_v6 }
 0x5f0   : > { %2541 = vmatprep.subr.bf16.mxu0 %v2811_v0 }
 0x5f3   : > { %2542 = vmatpush3.bf16.msra.mxu0 %v2695_v7 }
 0x5f4   : > { %2543 = vmatprep.subr.bf16.mxu0 %v2811_v0 }
 0x5f7   : > { %2544 = vmatpush3.bf16.msra.mxu0 %v2696_v8 }
 0x5f8   : > { %2545 = vmatprep.subr.bf16.mxu0 %v2811_v0 }
 0x5fb   : > { %2546 = vmatpush3.bf16.msra.mxu0 %v2697_v9 }
 0x5fc   : > { %2557 = vmatprep.subr.bf16.mxu0 %v2811_v0 }
 0x5fe   : > { %2548 = vmatmul.mubr.bf16.vlgmr.msra.gmra.mrb[20].mxu0 %v1514_v11 }
 0x5ff   : > { %2558 = vmatpush3.bf16.msra.mxu0 %v2698_v10  ;;  %2573 = vmatprep.mubr.msk.bf16.mxu0 %vm2812_vm0, %v2811_v0 }
 0x600   : > { %2559 = vmatprep.subr.bf16.mxu0 %v2811_v0 }
 0x603   : > { %2560 = vmatpush3.bf16.msra.mxu0 %v2699_v12 }
 0x604   : > { %2561 = vmatprep.subr.bf16.mxu0 %v2811_v0 }
 0x607   : > { %2562 = vmatpush3.bf16.msra.mxu0 %v2700_v13 }
 0x608   : > { %2563 = vmatprep.subr.bf16.mxu0 %v2811_v0 }
 0x60b   : > { %2564 = vmatpush3.bf16.msra.mxu0 %v2701_v14 }
 0x60c   : > { %2565 = vmatprep.subr.bf16.mxu0 %v2811_v0 }
 0x60f   : > { %2566 = vmatpush3.bf16.msra.mxu0 %v2702_v15 }
 0x610   : > { %2567 = vmatprep.subr.bf16.mxu0 %v2811_v0 }
 0x613   : > { %2568 = vmatpush3.bf16.msra.mxu0 %v2703_v16 }
 0x614   : > { %2569 = vmatprep.subr.bf16.mxu0 %v2811_v0 }
 0x617   : > { %2570 = vmatpush3.bf16.msra.mxu0 %v2704_v17 }
 0x618   : > { %2571 = vmatprep.subr.bf16.mxu0 %v2811_v0 }
 0x61b   : > { %2572 = vmatpush3.bf16.msra.mxu0 %v2705_v18 }
 0x61e   : > { %2574 = vmatmul.mubr.bf16.vlgmr.msra.gmra.mrb[20].mxu0 %v1815_v19 }
 0x6f1   : > { %v1915_v21 = vpop.f32.mrb[20].mxu0 }
 0x6f2   : > { %v1929_v23 = vmul.f32 %v2269_v20, %v1915_v21  ;;  %v2575_v24 = vpop.f32.mrb[21].mxu0 }
 0x6f3   : > { %v1918_v25 = vpop.f32.mrb[22].mxu0 }
 0x6f4   : > { %v1937_v26 = vadd.f32 %v2270_v22, %v1929_v23  ;;  %v2576_v27 = vpop.f32.mrb[23].mxu0 }
 0x6f6   : > { %v1938_v0 = vmax.f32 %v1937_v26, 0.0 }
 0x6f8   : > { %v1939_v28 = vpack.c.bf16 %v1938_v0, %v1938_v0 }
 0x6fa   : > { %1940 = vst [vmem:[%s562_s21] sm:$0xf] %v1939_v28 }
 0x6fb PF: > { %s3395_s29 = sld [smem:[#allocation9_spill]] }
 0x701   : > { %s28_s18 = sadd.s32 1, %s3395_s29  }
 0x702   : > { %p25_p10 = scmp.ge.s32.totalorder %s28_s18, 4  }
 0x704   :  { %27 = sbr.rel (!%p25_p10) target bundleno = 6 (0x6), region = 151 }
 0x70b   :  { %1991 = vsyncpa [#allocation3], 1 }
 0x70c   :  { %1993 = vsyncpa [#allocation3 + $0x1], 1 }
 0x70d   :  { %1994 = vsyncpa [#allocation5], 1 }

</bundles_post_ra>
